<compile_context>
chip_gen: v7x
topology: tpu7x:2x2x1
jax: 0.10.0
libtpu: 0.0.40
codegen_flags: <defaults>
</compile_context>

<pallas_src>
import jax
import jax.numpy as jnp
from jax import lax
from jax.experimental import pallas as pl
from jax.experimental.pallas import tpu as pltpu


def _fused_conv_matmul_kernel(wt_ref, slab_ref, bias_ref, o_ref, acc_ref):
    """One (Cout, TM) output tile, accumulated over the contraction grid axis.

    wt_ref:   (Cout, TK)  bf16  merged-conv weights (tap-major columns)
    slab_ref: (TK, TM)    bf16  im2col patch-slab tile
    bias_ref: (Cout, 1)   f32   merged bias
    o_ref:    (Cout, TM)  f32   output tile (lane-dense: TM % 128 == 0)
    acc_ref:  (Cout, TM)  f32   VMEM accumulator scratch
    """
    k = pl.program_id(1)

    @pl.when(k == 0)
    def _():
        acc_ref[...] = jnp.zeros_like(acc_ref)

    # Single fat MXU matmul per step: (Cout, TK) @ (TK, TM), f32 accumulate.
    acc_ref[...] += jnp.dot(wt_ref[...], slab_ref[...],
                            preferred_element_type=jnp.float32)

    @pl.when(k == pl.num_programs(1) - 1)
    def _():
        o_ref[...] = (acc_ref[...] + bias_ref[...]).astype(o_ref.dtype)


def _merge_weights(weights_oihw, biases, num_kernels):
    """Merge the six 'same' convs into one centered KxK conv (exact by linearity)."""
    Cout, Cin = weights_oihw[0].shape[:2]
    K = 2 * num_kernels - 1
    P = num_kernels - 1
    w_mean = jnp.zeros((K, K, Cin, Cout), jnp.float32)
    for i, w in enumerate(weights_oihw):
        k = 2 * i + 1
        off = P - i
        w_hwio = jnp.transpose(w, (2, 3, 1, 0)).astype(jnp.float32)  # (k,k,Cin,Cout)
        w_mean = w_mean.at[off:off + k, off:off + k, :, :].add(w_hwio)
    w_mean = w_mean / num_kernels                         # (K, K, Cin, Cout)
    b_mean = (sum(biases) / num_kernels).astype(jnp.float32)   # (Cout,)
    return w_mean, b_mean


def _im2col_transposed(x_nchw, K, P):
    """(B,Cin,H,W) -> patch slab (K*K*Cin, B*H*W).  Pure gather, zero FLOPs."""
    B, Cin, H, W = x_nchw.shape
    x_nhwc = jnp.transpose(x_nchw, (0, 2, 3, 1)).astype(jnp.float32)
    xp = jnp.pad(x_nhwc, ((0, 0), (P, P), (P, P), (0, 0)))     # (B, Hp, Wp, Cin)
    taps = []
    for dy in range(K):
        for dx in range(K):
            taps.append(xp[:, dy:dy + H, dx:dx + W, :])        # (B, H, W, Cin)
    patches = jnp.stack(taps, axis=3)                          # (B, H, W, K*K, Cin)
    slab = patches.reshape(B * H * W, K * K * Cin)             # rows=(b,y,x) cols=(dy,dx,c)
    return slab.T                                              # (K*K*Cin, B*H*W)


def inception_block_v1(x_nchw, weights_oihw, biases, num_kernels, *, tm=256, tk=256):
    """Forward pass of Inception_Block_V1.

    x_nchw:        (B, Cin, H, W)   float32, NCHW like torch
    weights_oihw:  list of (Cout, Cin, k, k) with k = 2*i+1 (torch layout)
    biases:        list of (Cout,)
    returns:       (B, Cout, H, W)  NCHW, mean over the num_kernels convs
    """
    B, Cin, H, W = x_nchw.shape
    Cout = weights_oihw[0].shape[0]
    K = 2 * num_kernels - 1          # largest kernel (11)
    P = num_kernels - 1              # its 'same' padding (5)
    KKC = K * K * Cin                # fat contraction dim
    M = B * H * W                    # GEMM M dim (batch folded in)

    # ---- layout / parameter plumbing (plain JAX, zero conv FLOPs) ----------
    w_mean, b_mean = _merge_weights(weights_oihw, biases, num_kernels)
    wt = jnp.transpose(w_mean.reshape(KKC, Cout))          # (Cout, KKC)
    slab_t = _im2col_transposed(x_nchw, K, P)              # (KKC, M)

    # Pad contraction and M dims to tile multiples (zero rows/cols add 0).
    Kp = pl.cdiv(KKC, tk) * tk
    Mp = pl.cdiv(M, tm) * tm
    wt_p = jnp.pad(wt, ((0, 0), (0, Kp - KKC))).astype(jnp.bfloat16)
    slab_p = jnp.pad(slab_t, ((0, Kp - KKC), (0, Mp - M))).astype(jnp.bfloat16)
    bias = b_mean.reshape(Cout, 1)                         # stays f32

    grid = (Mp // tm, Kp // tk)      # (parallel M blocks, taps*Cin reduction)
    out_t = pl.pallas_call(
        _fused_conv_matmul_kernel,
        out_shape=jax.ShapeDtypeStruct((Cout, Mp), jnp.float32),
        grid=grid,
        in_specs=[
            pl.BlockSpec((Cout, tk), lambda m, k: (0, k)),   # weights stream over k
            pl.BlockSpec((tk, tm), lambda m, k: (k, m)),     # patch-slab tile
            pl.BlockSpec((Cout, 1), lambda m, k: (0, 0)),    # bias
        ],
        out_specs=pl.BlockSpec((Cout, tm), lambda m, k: (0, m)),   # lane-dense
        scratch_shapes=[pltpu.VMEM((Cout, tm), jnp.float32)],
        compiler_params=pltpu.CompilerParams(
            dimension_semantics=("parallel", "arbitrary"),
            # Raised above the v5e default; well under physical VMEM on
            # v5e/v6e (128 MiB) and v7x (64 MiB).  Working set here is < 1 MiB.
            vmem_limit_bytes=32 * 1024 * 1024,
        ),
    )(wt_p, slab_p, bias)

    out = out_t[:, :M].reshape(Cout, B, H, W)              # drop M padding
    return jnp.transpose(out, (1, 0, 2, 3))                # back to NCHW


# ----------------------------- references ----------------------------------
def _reference(x_nchw, weights_oihw, biases, num_kernels):
    """Exact f32 reference: six separate convs, stack, mean (mirrors torch)."""
    outs = []
    for i in range(num_kernels):
        out = lax.conv_general_dilated(
            x_nchw, weights_oihw[i], window_strides=(1, 1),
            padding=[(i, i), (i, i)],
            dimension_numbers=("NCHW", "OIHW", "NCHW"),
            precision=lax.Precision.HIGHEST)
        outs.append(out + biases[i][None, :, None, None])
    return jnp.mean(jnp.stack(outs, axis=-1), axis=-1)


def _reference_bf16_inputs(x_nchw, weights_oihw, biases, num_kernels):
    """Same numerics as the Pallas path (merged conv, bf16-quantized inputs,
    f32 accumulation) -> isolates accumulation-order differences only."""
    P = num_kernels - 1
    w_mean, b_mean = _merge_weights(x_like_weights := weights_oihw, biases, num_kernels)
    del x_like_weights
    w_oihw = jnp.transpose(w_mean, (3, 2, 0, 1))
    w_q = w_oihw.astype(jnp.bfloat16).astype(jnp.float32)
    x_q = x_nchw.astype(jnp.bfloat16).astype(jnp.float32)
    out = lax.conv_general_dilated(
        x_q, w_q, window_strides=(1, 1), padding=[(P, P), (P, P)],
        dimension_numbers=("NCHW", "OIHW", "NCHW"),
        precision=lax.Precision.HIGHEST)
    return out + b_mean[None, :, None, None]


if __name__ == "__main__":
    B, Cin, Cout, H, W = 2, 4, 8, 16, 16
    num_kernels = 6

    key = jax.random.PRNGKey(0)
    kx, *kws = jax.random.split(key, num_kernels + 1)
    x = jax.random.normal(kx, (B, Cin, H, W), dtype=jnp.float32)

    # Deterministic in-script init mirroring _initialize_weights():
    # kaiming_normal_(mode='fan_out', nonlinearity='relu'), bias = 0.
    weights, biases = [], []
    for i in range(num_kernels):
        k = 2 * i + 1
        fan_out = Cout * k * k
        std = (2.0 / fan_out) ** 0.5
        weights.append(std * jax.random.normal(kws[i], (Cout, Cin, k, k),
                                               dtype=jnp.float32))
        biases.append(jnp.zeros((Cout,), jnp.float32))

    out = inception_block_v1(x, weights, biases, num_kernels)
    out = jax.block_until_ready(out)
    assert out.shape == (B, Cout, H, W)

    # Tight check: reference with identical bf16-input / f32-accumulate math;
    # the only remaining difference is accumulation order.
    ref_q = _reference_bf16_inputs(x, weights, biases, num_kernels)
    err_q = float(jnp.max(jnp.abs(out - ref_q)))
    assert err_q < 1e-3, f"max abs err vs bf16-input reference {err_q}"

    # Loose check: exact f32 reference of the torch module; the gap is purely
    # the bf16 quantization of the MXU inputs (accumulation stays f32).
    ref = _reference(x, weights, biases, num_kernels)
    err = float(jnp.max(jnp.abs(out - ref)))
    assert err < 5e-2, f"max abs err vs f32 reference {err}"

    print("KERNEL_OK")
</pallas_src>

<mosaic_0001>
module attributes {stable_mosaic.version = 11 : i64} {
  func.func @_fused_conv_matmul_kernel(%arg0: i32, %arg1: i32, %arg2: memref<8x256xbf16, #tpu.memory_space<vmem>>, %arg3: memref<256x256xbf16, #tpu.memory_space<vmem>>, %arg4: memref<8x1xf32, #tpu.memory_space<vmem>>, %arg5: memref<8x256xf32, #tpu.memory_space<vmem>>, %arg6: memref<8x256xf32, #tpu.memory_space<vmem>>) attributes {dimension_semantics = [#tpu.dimension_semantics<parallel>, #tpu.dimension_semantics<arbitrary>], iteration_bounds = array<i64: 2, 2>, scalar_prefetch = 0 : i64, scratch_operands = 1 : i64, tpu.core_type = #tpu.core_type<tc>, window_params = [{transform_indices = @transform_0, window_bounds = array<i64: 8, 256>}, {transform_indices = @transform_1, window_bounds = array<i64: 256, 256>}, {pipeline_mode = #tpu.pipeline_mode<synchronous>, transform_indices = @transform_2, window_bounds = array<i64: 8, 1>}, {transform_indices = @transform_3, window_bounds = array<i64: 8, 256>}]} {
    %c0_i32 = arith.constant 0 : i32
    %0 = arith.cmpi eq, %arg1, %c0_i32 : i32
    %1 = arith.extui %0 : i1 to i32
    %c0_i32_0 = arith.constant 0 : i32
    %2 = arith.cmpi ne, %1, %c0_i32_0 : i32
    scf.if %2 {
      %cst_9 = arith.constant 0.000000e+00 : f32
      %12 = vector.broadcast %cst_9 : f32 to vector<8x256xf32>
      %c0_10 = arith.constant 0 : index
      %c0_11 = arith.constant 0 : index
      %13 = vector.load %arg6[%c0_10, %c0_11] : memref<8x256xf32, #tpu.memory_space<vmem>>, vector<8x256xf32>
      tpu.vector_store %arg6[%c0_10, %c0_11], %12 {strides = array<i32>} : memref<8x256xf32, #tpu.memory_space<vmem>>, vector<8x256xf32>,
    } else {
    }
    %c0 = arith.constant 0 : index
    %c0_1 = arith.constant 0 : index
    %3 = vector.load %arg6[%c0, %c0_1] : memref<8x256xf32, #tpu.memory_space<vmem>>, vector<8x256xf32>
    %c0_2 = arith.constant 0 : index
    %c0_3 = arith.constant 0 : index
    %4 = vector.load %arg2[%c0_2, %c0_3] : memref<8x256xbf16, #tpu.memory_space<vmem>>, vector<8x256xbf16>
    %c0_4 = arith.constant 0 : index
    %c0_5 = arith.constant 0 : index
    %5 = vector.load %arg3[%c0_4, %c0_5] : memref<256x256xbf16, #tpu.memory_space<vmem>>, vector<256x256xbf16>
    %cst = arith.constant dense<0.000000e+00> : vector<8x256xf32>
    %6 = tpu.matmul %4, %5, %cst {dimension_numbers = #tpu.dot_dimension_numbers<[1], [0], [0], [1], [0, 0, 1, 1], [], []>} : vector<8x256xbf16>, vector<256x256xbf16>, vector<8x256xf32> -> vector<8x256xf32>
    %7 = arith.addf %3, %6 : vector<8x256xf32>
    %c0_6 = arith.constant 0 : index
    %c0_7 = arith.constant 0 : index
    %8 = vector.load %arg6[%c0_6, %c0_7] : memref<8x256xf32, #tpu.memory_space<vmem>>, vector<8x256xf32>
    tpu.vector_store %arg6[%c0_6, %c0_7], %7 {strides = array<i32>} : memref<8x256xf32, #tpu.memory_space<vmem>>, vector<8x256xf32>,
    %c1_i32 = arith.constant 1 : i32
    %9 = arith.cmpi eq, %arg1, %c1_i32 : i32
    %10 = arith.extui %9 : i1 to i32
    %c0_i32_8 = arith.constant 0 : i32
    %11 = arith.cmpi ne, %10, %c0_i32_8 : i32
    scf.if %11 {
      %c0_9 = arith.constant 0 : index
      %c0_10 = arith.constant 0 : index
      %12 = vector.load %arg6[%c0_9, %c0_10] : memref<8x256xf32, #tpu.memory_space<vmem>>, vector<8x256xf32>
      %c0_11 = arith.constant 0 : index
      %c0_12 = arith.constant 0 : index
      %13 = vector.load %arg4[%c0_11, %c0_12] : memref<8x1xf32, #tpu.memory_space<vmem>>, vector<8x1xf32>
      %14 = vector.broadcast %13 : vector<8x1xf32> to vector<8x256xf32>
      %15 = arith.addf %12, %14 : vector<8x256xf32>
      %c0_13 = arith.constant 0 : index
      %c0_14 = arith.constant 0 : index
      %16 = vector.load %arg5[%c0_13, %c0_14] : memref<8x256xf32, #tpu.memory_space<vmem>>, vector<8x256xf32>
      tpu.vector_store %arg5[%c0_13, %c0_14], %15 {strides = array<i32>} : memref<8x256xf32, #tpu.memory_space<vmem>>, vector<8x256xf32>,
    } else {
    }
    return
  }
  func.func @transform_0(%arg0: i32, %arg1: i32) -> (i32, i32) {
    %c0_i32 = arith.constant 0 : i32
    %c0_i32_0 = arith.constant 0 : i32
    return %c0_i32, %arg1 : i32, i32
  }
  func.func @transform_1(%arg0: i32, %arg1: i32) -> (i32, i32) {
    %c0_i32 = arith.constant 0 : i32
    return %arg1, %arg0 : i32, i32
  }
  func.func @transform_2(%arg0: i32, %arg1: i32) -> (i32, i32) {
    %c0_i32 = arith.constant 0 : i32
    %c0_i32_0 = arith.constant 0 : i32
    %c0_i32_1 = arith.constant 0 : i32
    return %c0_i32, %c0_i32_0 : i32, i32
  }
  func.func @transform_3(%arg0: i32, %arg1: i32) -> (i32, i32) {
    %c0_i32 = arith.constant 0 : i32
    %c0_i32_0 = arith.constant 0 : i32
    return %c0_i32, %arg0 : i32, i32
  }
}

</mosaic_0001>

<bundles_post_ra>
// kernel: tpu_custom_call.1
= control target key start
LH: loop header
LB: loop body
LE: loop exit
PB: predicated region body
PF: predicated region fallthrough
CT: control target
= control target key end

     0   :  { %8 = vsyncpa [#allocation4], 0  ;;  %s1507_s0 = inlined_call_operand.hbm [shape: bf16[8,512], index: 0, kind: input, shape index: {}]   ;;  %s1508_s1 = inlined_call_operand.hbm [shape: bf16[512,512], index: 1, kind: input, shape index: {}]   ;;  %s1509_s2 = inlined_call_operand.vmem [shape: f32[8,1], index: 2, kind: input, shape index: {}]   ;;  %s1510_s3 = inlined_call_operand.hbm [shape: f32[8,512], index: 3, kind: output, shape index: {}]  }
   0x1   :  { %10 = vsyncpa [#allocation4 + $0x1], 0 }
   0x2   :  { %11 = vsyncpa [#allocation7], 0 }
   0x3   :  { %13 = vsyncpa [#allocation7 + $0x1], 0 }
   0x4   :  { %14 = vsyncpa [#allocation5], 0 }
   0x5   :  { %16 = vsyncpa [#allocation5 + $0x1], 0  ;;  %s1126_s12 = smov 0   ;;  %s1128_s13 = smov 0  }
   0x6   :  { %s1130_s14 = smov 0   ;;  %s1132_s15 = smov 0  }
   0x7   :  { %s1134_s16 = smov 0   ;;  %s1136_s17 = smov 0  }
   0x8   :  { %s1138_s18 = smov 0   ;;  %s1140_s19 = smov 0  }
   0x9   :  { %s1142_s20 = smov 0   ;;  %s1144_s21 = smov 0  }
   0xa   :  { %s1146_s22 = smov 0   ;;  %s1148_s23 = smov 0  }
   0xb   :  { %s1150_s24 = smov 0   ;;  %s1152_s25 = smov 0  }
   0xc LB: > { %1520 = sst [smem:[#allocation12_spill]] %s1052_s14  ;;  %s639_s26 = sadd.s32 4294967295, %s1096_s25   ;;  %s1096_s25 = sphi %s1152_s25, %s22_s25   ;;  %s1092_s24 = sphi %s1150_s24, %s1553_s24   ;;  %s1088_s23 = sphi %s1148_s23, %s1552_s23   ;;  %s1084_s22 = sphi %s1146_s22, %s1551_s22   ;;  %s1080_s21 = sphi %s1144_s21, %s1562_s21   ;;  %s1076_s20 = sphi %s1142_s20, %s1561_s20   ;;  %s1072_s19 = sphi %s1140_s19, %s1560_s19   ;;  %s1068_s18 = sphi %s1138_s18, %s1559_s18   ;;  %s1064_s17 = sphi %s1136_s17, %s1558_s17   ;;  %s1060_s16 = sphi %s1134_s16, %s1557_s16   ;;  %s1056_s15 = sphi %s1132_s15, %s1556_s15   ;;  %s1052_s14 = sphi %s1130_s14, %s1546_s14   ;;  %s1048_s13 = sphi %s1128_s13, %s1555_s13   ;;  %s1044_s12 = sphi %s1126_s12, %s1554_s12  }
   0xd   : > { %1521 = sst [smem:[#allocation13_spill]] %s1076_s20  ;;  %s31_s28 = sadd.s32 1, %s1088_s23 }
   0xe   : > { %1522 = sst [smem:[#allocation14_spill]] %s1088_s23  ;;  %s34_s29 = sadd.s32 1, %s1092_s24 }
   0xf   : > { %1523 = sst [smem:[#allocation15_spill]] %s1092_s24  ;;  %p32_p0 = scmp.ge.s32.totalorder %s31_s28, 2 }
  0x10   : > { %s41_s30 = sadd.s32 1, %s1076_s20  ;;  %p48_p1 = scmp.ne.s32.totalorder %s1076_s20, %s1072_s19 }
  0x11   : > { %p49_p2 = scmp.eq.s32.totalorder %s1096_s25, 0  ;;  %s1564_s28 = smov (%p32_p0, %s31_s28), 0 }
  0x12   : > { %1524 = sst [smem:[#allocation16_spill]] %s1564_s28  ;;  %s1566_s29 = smov (!%p32_p0, %s34_s29), %s1092_s24 }
  0x13   : > { %s38_s4 = ssub.s32 %s1088_s23, %s1564_s28  ;;  %p1209_p3 = por %p49_p2, %p48_p1 }
  0x14   : > { %p36_p4 = scmp.ge.s32.totalorder %s1566_s29, 2  ;;  %p39_p5 = scmp.eq.s32.totalorder %s38_s4, 0 }
  0x15   : > { %p54_p6 = scmp.ne.s32.totalorder %s1072_s19, %s1068_s18  ;;  %p1216_p7 = scmp.eq.s32.totalorder %s639_s26, 0 }
  0x16   : > { %s1568_s29 = smov (%p36_p4, %s1566_s29), 0  ;;  %s69_s11 = sadd.s32 1, %s1064_s17 }
  0x17   : > { %1527 = sst [smem:[#allocation17_spill]] %s1568_s29  ;;  %p1227_p8 = por %p1216_p7, %p54_p6 }
  0x18   : > { %s1223_s7 = scalar_select %p39_p5, %s1076_s20, %s41_s30  }
  0x19   : > { %s1529_s8 = scalar_select %p1227_p8, 1, 0 }
  0x1a   : > { %1528 = sst [smem:[#allocation18_spill]] %s1223_s7  ;;  %s65_s9 = ssub.s32 %s1092_s24, %s1568_s29 }
  0x1b   : > { %s66_s10 = sor.u32 %s65_s9, %s38_s4  ;;  %p76_p10 = scmp.ne.s32.totalorder %s1064_s17, %s1060_s16 }
  0x1c   : > { %p67_p9 = scmp.eq.s32.totalorder %s66_s10, 0  ;;  %p82_p11 = scmp.ne.s32.totalorder %s1060_s16, %s1056_s15 }
  0x1d   : > { %p114_p12 = scmp.eq.s32.totalorder %s65_s9, 0  ;;  %p1243_p13 = por %p76_p10, %p49_p2 }
  0x1e   : > { %s1239_s18 = scalar_select %p67_p9, %s1064_s17, %s69_s11  }
  0x1f   : > { %p1249_p0 = por %p82_p11, %p1216_p7  ;;  %s116_s4 = sadd.s32 1, %s1052_s14 }
  0x20   : > { %1530 = sst [smem:[#allocation19_spill]] %s1239_s18  ;;  %p126_p1 = scmp.ne.s32.totalorder %s1052_s14, %s1048_s13 }
  0x21   : > { %s1532_s27 = scalar_select %p1249_p0, 1, 0 }
  0x22   : > { %s1257_s10 = scalar_select %p114_p12, %s1052_s14, %s116_s4  }
  0x23   : > { %p127_p4 = scmp.eq.s32.totalorder %s639_s26, 3  ;;  %p132_p5 = scmp.ne.s32.totalorder %s1048_s13, %s1044_s12 }
  0x24   : > { %1533 = sst [smem:[#allocation20_spill]] %s1257_s10  ;;  %s1534_s15 = sadd.s32 4294967294, %s1096_s25  }
  0x25   : > { %p133_p2 = scmp.eq.s32.totalorder %s1534_s15, 3  ;;  %p1265_p6 = por %p127_p4, %p126_p1 }
  0x26   : > { %p716_p7 = scmp.lt.s32.totalorder %s1096_s25, 4  ;;  %s156_s11 = sand.u32 1, %s1076_s20  }
  0x27   : > { %s1535_s9 = scalar_select %p1265_p6, 1, 0 }
  0x28   : > { %p1270_p9 = por %p133_p2, %p132_p5  ;;  %s643_s29 = sshll.u32 %s156_s11, 3 }
  0x29   : > { %s696_s28 = sshll.u32 %s1088_s23, 7  ;;  %s160_s26 = scalar_lea.vmem [#allocation3], %s643_s29 }
  0x2a   : > { %s1536_s6 = scalar_select %p1270_p9, 1, 0 }
  0x2b   : > { %s1279_s18 = scalar_lea.hbm %s1507_s0, %s696_s28  ;;  %s168_s15 = sshll.u32 %s160_s26, 4  ;;  %s1281_s15 = int_to_ptr.vmem [resolvable:$true] %s168_s15 }
  0x2c   : > { %p1285_p10 = pnand %p716_p7, %p1209_p3  ;;  %s648_s23 = sshll.u32 %s1092_s24, 1 }
  0x2d   : > { %p1292_p11 = pnand %p716_p7, %p1243_p13  ;;  %s1296_s4 = sadd.s32 %s696_s28, %s648_s23 }
  0x2e   : > { %s157_s29 = scalar_lea.sflag [#allocation4], %s156_s11  ;;  %s886_s26 = scalar_lea.hbm %s1279_s18, 128 }
  0x2f   : > { %p887_p12 = scmp.ne.s32.totalorder %s1279_s18, %s886_s26  ;;  %p888_p1 = pneg %p1285_p10 }
  0x30   : > { %s891_s24 = scalar_lea.hbm %s1507_s0, 256  ;;  %p892_p13 = scmp.lt.u32.totalorder %s1279_s18, %s1507_s0 }
  0x31   : > { %p889_p3 = pnand %p888_p1, %p887_p12  ;;  %p893_p5 = scmp.lt.u32.totalorder %s891_s24, %s886_s26 }
  0x32   : > { %p895_p7 = scmp.lt.u32.totalorder %s886_s26, %s1279_s18 }
  0x33   : > { %p890_p4 = pneg %p889_p3  ;;  %p894_p2 = por %p893_p5, %p892_p13 }
  0x35   : > { %p896_p9 = por %p895_p7, %p894_p2 }
  0x37   : > { %p897_p6 = pnand %p896_p9, %p890_p4 }
  0x39   : > { %900 = shalt.err (!%p897_p6)
}
  0x3a   : > { %s901_s23 = scalar_lea.vmem %s1281_s15, 128  ;;  %s1098_s20 = smov [#allocation3]  }
  0x3b   : > { %p902_p12 = scmp.ne.s32.totalorder %s1281_s15, %s901_s23  ;;  %s906_s28 = sshll.u32 %s1098_s20, 4  ;;  %s907_s28 = int_to_ptr.vmem [resolvable:$false] %s906_s28 }
  0x3c   : > { %s908_s14 = scalar_lea.vmem %s907_s28, 256  ;;  %p909_p8 = scmp.lt.s32.totalorder %s1281_s15, %s907_s28 }
  0x3d   : > { %p904_p3 = pnand %p902_p12, %p888_p1  ;;  %p910_p13 = scmp.lt.s32.totalorder %s908_s14, %s901_s23 }
  0x3f   : > { %p905_p0 = pneg %p904_p3  ;;  %p911_p5 = por %p910_p13, %p909_p8 }
  0x41   : > { %p912_p2 = pnand %p911_p5, %p905_p0 }
  0x43   : > { %915 = shalt.err (!%p912_p2)
}
  0x44   : > { %708 = dma.hbm_to_vmem [thread:$0]  (!%p1285_p10), %s1279_s18, 128, %s1281_s15, %s157_s29  }
  0x45   : > { %s650_s24 = sshll.u32 %s1296_s4, 6  ;;  %p651_p8 = scmp.ge.s32.totalorder %s1096_s25, 1 }
  0x46   : > { %s1327_s5 = scalar_lea.hbm %s1508_s1, %s650_s24  ;;  %p197_p0 = scmp.lt.s32.totalorder %s1096_s25, 5 }
  0x47   : > { %s175_s10 = sand.u32 1, %s1064_s17   ;;  %s916_s4 = scalar_lea.hbm %s1327_s5, 4096 }
  0x48   : > { %s646_s30 = sshll.u32 %s175_s10, 8  ;;  %p1332_p6 = pnand %p651_p8, %p197_p0 }
  0x49   : > { %s179_s20 = scalar_lea.vmem [#allocation6], %s646_s30  ;;  %s1338_s15 = scalar_lea.sflag [#allocation7], %s175_s10 }
  0x4a   : > { %s189_s18 = sshll.u32 %s179_s20, 4  ;;  %p917_p9 = scmp.ne.s32.totalorder %s1327_s5, %s916_s4  ;;  %s1336_s18 = int_to_ptr.vmem [resolvable:$true] %s189_s18 }
  0x4b   : > { %p918_p10 = pneg %p1292_p11  ;;  %s921_s14 = scalar_lea.hbm %s1508_s1, 16384 }
  0x4c   : > { %p922_p7 = scmp.lt.u32.totalorder %s1327_s5, %s1508_s1  ;;  %p923_p12 = scmp.lt.u32.totalorder %s921_s14, %s916_s4 }
  0x4d   : > { %p919_p1 = pnand %p918_p10, %p917_p9  ;;  %p925_p13 = scmp.lt.u32.totalorder %s916_s4, %s1327_s5 }
  0x4e   : > { %p924_p3 = por %p923_p12, %p922_p7 }
  0x4f   : > { %p920_p4 = pneg %p919_p1 }
  0x50   : > { %p926_p5 = por %p925_p13, %p924_p3 }
  0x52   : > { %p927_p2 = pnand %p926_p5, %p920_p4 }
  0x54   : > { %930 = shalt.err (!%p927_p2)
}
  0x55   : > { %s931_s26 = scalar_lea.vmem %s1336_s18, 4096  ;;  %s1099_s10 = smov [#allocation6]  }
  0x56   : > { %p932_p8 = scmp.ne.s32.totalorder %s1336_s18, %s931_s26  ;;  %s936_s30 = sshll.u32 %s1099_s10, 4  ;;  %s937_s30 = int_to_ptr.vmem [resolvable:$false] %s936_s30 }
  0x57   : > { %s938_s20 = scalar_lea.vmem %s937_s30, 8192  ;;  %p939_p1 = scmp.lt.s32.totalorder %s1336_s18, %s937_s30 }
  0x58   : > { %p934_p0 = pnand %p932_p8, %p918_p10  ;;  %p940_p7 = scmp.lt.s32.totalorder %s938_s20, %s931_s26 }
  0x5a   : > { %p935_p9 = pneg %p934_p0  ;;  %p941_p12 = por %p940_p7, %p939_p1 }
  0x5c   : > { %p942_p3 = pnand %p941_p12, %p935_p9 }
  0x5e   : > { %945 = shalt.err (!%p942_p3)
}
  0x5f   : > { %s1100_s4 = smov 256   ;;  %s1101_s29 = smov 128  }
  0x60   : > { %s1102_s28 = smov 8   ;;  %201 = sbr.rel (%p1332_p6) target bundleno = 433 (0x1b1), region = 32 }
  0x61   : > { %711 = dma.hbm_to_vmem [thread:$0]  (!%p1292_p11), %s1327_s5, 4096, %s1336_s18, %s1338_s15, %s1100_s4, %s1101_s29, %s1102_s28  }
  0x62   : > { %s203_s14 = sand.u32 (!%p1332_p6), 1, %s1072_s19   ;;  %p1540_p10 = scmp.ne.s32.totalorder (!%p1332_p6), %s1529_s8, 0 }
  0x63   : > { %s1369_s24 = sshll.u32 (!%p1332_p6), %s203_s14, 3  ;;  %s204_s11 = scalar_lea.sflag (!%p1332_p6), [#allocation4], %s203_s14 }
  0x64   : > { %s207_s26 = scalar_lea.vmem (!%p1332_p6), [#allocation3], %s1369_s24 }
  0x67   : > { %1031 = dma.done.wait (%p1540_p10), %s204_s11, 128  }
  0x68   : > { %1033 = vsyncadd (%p1540_p10), %s204_s11, 4294967168  ;;  %s212_s7 = sand.u32 1, %s1060_s16   ;;  %p1541_p11 = scmp.ne.s32.totalorder %s1532_s27, 0 }
  0x69   : > { %s653_s5 = sshll.u32 %s212_s7, 8  ;;  %s213_s18 = scalar_lea.sflag [#allocation7], %s212_s7 }
  0x6a   : > { %s1377_s23 = scalar_lea.vmem [#allocation6], %s653_s5 }
  0x6b   : > { %1035 = dma.done.wait (%p1541_p11), %s213_s18, 4096  }
  0x6c   : > { %1037 = vsyncadd (%p1541_p11), %s213_s18, 4294963200  ;;  %s241_s15 = sand.u32 1, %s1048_s13   ;;  %p655_p6 = scmp.ne.s32.totalorder %s1080_s21, 0 }
  0x6d   : > { %s654_s10 = sshll.u32 %s241_s15, 4  ;;  %v1103_v0 = vmov (!%p655_p6), 0.0  }
  0x6e   : > { %s1386_s30 = scalar_lea.vmem [#allocation8], %s654_s10  ;;  %251 = sbr.rel (%p655_p6) target bundleno = 117 (0x75), region = 44  ;;  %252 = vst [vmem:[#allocation2] sm:$0xff] (!%p655_p6), %v1103_v0  ;;  %253 = vst [vmem:[#allocation2 + $0x8] sm:$0xff] (!%p655_p6), %v1103_v0 }
  0x75 PF: > { %v835_v1 = vld [vmem:[%s1377_s23 + $0x4] ss:$8 sps:$4 sm:$0xff]   ;;  %v837_v2 = vld [vmem:[%s1377_s23] ss:$8 sps:$4 sm:$0xff]   ;;  %v838_v3 = vld [vmem:[%s1377_s23 + $0x14] ss:$8 sps:$4 sm:$0xff]  }
  0x76   : > { %456 = vmatprep.subr.bf16.mxu0 %v835_v1  ;;  %v840_v4 = vld [vmem:[%s1377_s23 + $0x10] ss:$8 sps:$4 sm:$0xff]   ;;  %v841_v5 = vld [vmem:[%s1377_s23 + $0x24] ss:$8 sps:$4 sm:$0xff]   ;;  %v843_v6 = vld [vmem:[%s1377_s23 + $0x20] ss:$8 sps:$4 sm:$0xff]  }
  0x77   : > { %457 = vmatpush1.bf16.msra.mxu0 %v837_v2  ;;  %v844_v7 = vld [vmem:[%s1377_s23 + $0x34] ss:$8 sps:$4 sm:$0xff]   ;;  %v846_v8 = vld [vmem:[%s1377_s23 + $0x30] ss:$8 sps:$4 sm:$0xff]   ;;  %v847_v9 = vld [vmem:[%s1377_s23 + $0x44] ss:$8 sps:$4 sm:$0xff]  }
  0x78   : > { %458 = vmatprep.subr.bf16.mxu0 %v838_v3  ;;  %v849_v10 = vld [vmem:[%s1377_s23 + $0x40] ss:$8 sps:$4 sm:$0xff]   ;;  %v850_v11 = vld [vmem:[%s1377_s23 + $0x54] ss:$8 sps:$4 sm:$0xff]   ;;  %v852_v12 = vld [vmem:[%s1377_s23 + $0x50] ss:$8 sps:$4 sm:$0xff]  }
  0x79   : > { %v853_v13 = vld [vmem:[%s1377_s23 + $0x64] ss:$8 sps:$4 sm:$0xff]   ;;  %v256_v14 = vld [vmem:[%s207_s26] sm:$0xff]  ;;  %v855_v16 = vld [vmem:[%s1377_s23 + $0x60] ss:$8 sps:$4 sm:$0xff]   ;;  %p690_p4 = scmp.ne.s32.totalorder %s1080_s21, 1 }
  0x7a   : > { %v657_v15 = vcombine.high %v256_v14, %v256_v14  ;;  %v856_v17 = vld [vmem:[%s1377_s23 + $0x74] ss:$8 sps:$4 sm:$0xff]   ;;  %v858_v18 = vld [vmem:[%s1377_s23 + $0x70] ss:$8 sps:$4 sm:$0xff]   ;;  %v859_v19 = vld [vmem:[%s1377_s23 + $0x84] ss:$8 sps:$4 sm:$0xff]   ;;  %v656_v35 = vcombine.low %v256_v14, %v256_v14 }
  0x7b   : > { %459 = vmatpush1.bf16.msra.mxu0 %v840_v4  ;;  %v861_v20 = vld [vmem:[%s1377_s23 + $0x80] ss:$8 sps:$4 sm:$0xff]   ;;  %v862_v21 = vld [vmem:[%s1377_s23 + $0x94] ss:$8 sps:$4 sm:$0xff]   ;;  %v864_v22 = vld [vmem:[%s1377_s23 + $0x90] ss:$8 sps:$4 sm:$0xff]  }
  0x7c   : > { %460 = vmatprep.subr.bf16.mxu0 %v841_v5  ;;  %488 = vmatprep.mubr.bf16.mxu0 %v657_v15  ;;  %v865_v23 = vld [vmem:[%s1377_s23 + $0xa4] ss:$8 sps:$4 sm:$0xff]   ;;  %v867_v24 = vld [vmem:[%s1377_s23 + $0xa0] ss:$8 sps:$4 sm:$0xff]   ;;  %v868_v25 = vld [vmem:[%s1377_s23 + $0xb4] ss:$8 sps:$4 sm:$0xff]  }
  0x7d   : > { %v870_v26 = vld [vmem:[%s1377_s23 + $0xb0] ss:$8 sps:$4 sm:$0xff]   ;;  %v871_v27 = vld [vmem:[%s1377_s23 + $0xc4] ss:$8 sps:$4 sm:$0xff]   ;;  %v873_v28 = vld [vmem:[%s1377_s23 + $0xc0] ss:$8 sps:$4 sm:$0xff]  }
  0x7e   : > { %v874_v29 = vld [vmem:[%s1377_s23 + $0xd4] ss:$8 sps:$4 sm:$0xff]   ;;  %v876_v30 = vld [vmem:[%s1377_s23 + $0xd0] ss:$8 sps:$4 sm:$0xff]   ;;  %v877_v31 = vld [vmem:[%s1377_s23 + $0xe4] ss:$8 sps:$4 sm:$0xff]  }
  0x7f   : > { %461 = vmatpush1.bf16.msra.mxu0 %v843_v6  ;;  %v879_v32 = vld [vmem:[%s1377_s23 + $0xe0] ss:$8 sps:$4 sm:$0xff]   ;;  %v880_v33 = vld [vmem:[%s1377_s23 + $0xf4] ss:$8 sps:$4 sm:$0xff]   ;;  %v882_v34 = vld [vmem:[%s1377_s23 + $0xf0] ss:$8 sps:$4 sm:$0xff]  }
  0x80   : > { %462 = vmatprep.subr.bf16.mxu0 %v844_v7  ;;  %v254_v36 = vld [vmem:[#allocation2] sm:$0xff]  ;;  %v255_v37 = vld [vmem:[#allocation2 + $0x8] sm:$0xff]  ;;  %v1104_v45 = vmov (!%p690_p4), 0  }
  0x81   : > { %v507_v44 = vld [vmem:[%s1509_s2] sm:$0xff] (!%p690_p4)  ;;  %885 = vset.pattern.permute.xlu0 (!%p690_p4), %v1104_v45 }
  0x82   : > { %510 = vperm.xlu0 (!%p690_p4), %885, %v507_v44  }
  0x83   : > { %463 = vmatpush1.bf16.msra.mxu0 %v846_v8 }
  0x84   : > { %464 = vmatprep.subr.bf16.mxu0 %v847_v9 }
  0x87   : > { %465 = vmatpush1.bf16.msra.mxu0 %v849_v10 }
  0x88   : > { %466 = vmatprep.subr.bf16.mxu0 %v850_v11 }
  0x8b   : > { %467 = vmatpush1.bf16.msra.mxu0 %v852_v12 }
  0x8c   : > { %468 = vmatprep.subr.bf16.mxu0 %v853_v13 }
  0x8f   : > { %469 = vmatpush1.bf16.msra.mxu0 %v855_v16 }
  0x90   : > { %470 = vmatprep.subr.bf16.mxu0 %v856_v17 }
  0x93   : > { %471 = vmatpush1.bf16.msra.mxu0 %v858_v18 }
  0x94   : > { %472 = vmatprep.subr.bf16.mxu0 %v859_v19 }
  0x97   : > { %473 = vmatpush1.bf16.msra.mxu0 %v861_v20 }
  0x98   : > { %474 = vmatprep.subr.bf16.mxu0 %v862_v21 }
  0x9b   : > { %475 = vmatpush1.bf16.msra.mxu0 %v864_v22 }
  0x9c   : > { %476 = vmatprep.subr.bf16.mxu0 %v865_v23 }
  0x9f   : > { %477 = vmatpush1.bf16.msra.mxu0 %v867_v24 }
  0xa0   : > { %478 = vmatprep.subr.bf16.mxu0 %v868_v25 }
  0xa3   : > { %479 = vmatpush1.bf16.msra.mxu0 %v870_v26 }
  0xa4   : > { %480 = vmatprep.subr.bf16.mxu0 %v871_v27 }
  0xa7   : > { %481 = vmatpush1.bf16.msra.mxu0 %v873_v28 }
  0xa8   : > { %482 = vmatprep.subr.bf16.mxu0 %v874_v29 }
  0xab   : > { %483 = vmatpush1.bf16.msra.mxu0 %v876_v30 }
  0xac   : > { %484 = vmatprep.subr.bf16.mxu0 %v877_v31 }
  0xaf   : > { %485 = vmatpush1.bf16.msra.mxu0 %v879_v32 }
  0xb0   : > { %486 = vmatprep.subr.bf16.mxu0 %v880_v33 }
  0xb3   : > { %487 = vmatpush1.bf16.msra.mxu0 %v882_v34 }
  0xb6   : > { %489 = vmatmul.mubr.bf16.vlgmr.msra.gmra.mrb[0].mxu0 %v656_v35 }
 0x101   : > { %v511_v48 = vpop.permute.xlu0 (!%p690_p4), %510 }
 0x187   : > { %504 = sbr.rel (%p690_p4) target bundleno = 408 (0x198), region = 48 }
 0x189   : > { %v490_v38 = vpop.f32.mrb[0].mxu0 }
 0x18a   : > { %v497_v39 = vadd.f32 %v490_v38, %v254_v36  ;;  %v492_v40 = vpop.f32.mrb[1].mxu0 }
 0x18b   : > { %v498_v41 = vadd.f32 %v492_v40, %v255_v37  ;;  %v494_v42 = vpop.f32.mrb[2].mxu0 }
 0x18c   : > { %499 = vst [vmem:[#allocation2] sm:$0xff] %v497_v39  ;;  %v495_v43 = vpop.f32.mrb[3].mxu0 }
 0x18d   : > { %500 = vst [vmem:[#allocation2 + $0x8] sm:$0xff] %v498_v41 }
 0x193   : > { %v505_v46 = vld [vmem:[#allocation2] sm:$0xff] }
 0x194   : > { %v506_v47 = vld [vmem:[#allocation2 + $0x8] sm:$0xff]  ;;  %v513_v49 = vadd.f32 %v511_v48, %v505_v46 }
 0x195   : > { %v514_v50 = vadd.f32 %v511_v48, %v506_v47 }
 0x196   : > { %515 = vst [vmem:[%s1386_s30] sm:$0xff] %v513_v49 }
 0x197   : > { %516 = vst [vmem:[%s1386_s30 + $0x8] sm:$0xff] %v514_v50 }
 0x198 PF: > { %s698_s21 = sshll.u32 %s1084_s22, 8  ;;  %s532_s28 = sshll.u32 %s1386_s30, 4  ;;  %s533_s28 = int_to_ptr.vmem [resolvable:$true] %s532_s28 }
 0x199   : > { %s1433_s29 = scalar_lea.hbm %s1510_s3, %s698_s21  ;;  %s518_s14 = scalar_lea.sflag [#allocation5], %s241_s15 }
 0x19a   : > { %s946_s24 = scalar_lea.vmem %s533_s28, 256  ;;  %p1542_p5 = scmp.ne.s32.totalorder %s1535_s9, 0 }
 0x19b   : > { %p947_p13 = scmp.ne.s32.totalorder %s533_s28, %s946_s24  ;;  %s1105_s11 = smov [#allocation8]  }
 0x19c   : > { %s950_s26 = sshll.u32 %s1105_s11, 4  ;;  %s951_s26 = int_to_ptr.vmem [resolvable:$false] %s950_s26 }
 0x19d   : > { %p948_p2 = pnand %p947_p13, %p1542_p5  ;;  %s952_s7 = scalar_lea.vmem %s951_s26, 512 }
 0x19e   : > { %p953_p0 = scmp.lt.s32.totalorder %s533_s28, %s951_s26  ;;  %p954_p9 = scmp.lt.s32.totalorder %s952_s7, %s946_s24 }
 0x19f   : > { %p949_p8 = pneg %p948_p2 }
 0x1a0   : > { %p955_p1 = por %p954_p9, %p953_p0 }
 0x1a2   : > { %p956_p7 = pnand %p955_p1, %p949_p8 }
 0x1a4   : > { %959 = shalt.err (!%p956_p7)
}
 0x1a5   : > { %s960_s22 = scalar_lea.hbm %s1433_s29, 256  ;;  %s964_s23 = scalar_lea.hbm %s1510_s3, 512 }
 0x1a6   : > { %p961_p12 = scmp.ne.s32.totalorder %s1433_s29, %s960_s22  ;;  %p965_p11 = scmp.lt.u32.totalorder %s1433_s29, %s1510_s3 }
 0x1a7   : > { %p966_p6 = scmp.lt.u32.totalorder %s964_s23, %s960_s22  ;;  %p968_p13 = scmp.lt.u32.totalorder %s960_s22, %s1433_s29 }
 0x1a8   : > { %p962_p3 = pnand %p961_p12, %p1542_p5 }
 0x1a9   : > { %p967_p4 = por %p966_p6, %p965_p11 }
 0x1aa   : > { %p963_p10 = pneg %p962_p3 }
 0x1ab   : > { %p969_p2 = por %p968_p13, %p967_p4 }
 0x1ad   : > { %p970_p8 = pnand %p969_p2, %p963_p10 }
 0x1af   : > { %973 = shalt.err (!%p970_p8)
}
 0x1b0   : > { %703 = dma.vmem_to_hbm [thread:$0]  (%p1542_p5), %s533_s28, 256, %s1433_s29, %s518_s14  }
 0x1b1 PF: > { %p717_p0 = scmp.ge.s32.totalorder %s1096_s25, 2  ;;  %s544_s30 = sand.u32 1, %s1044_s12  }
 0x1b2   : > { %p1543_p9 = scmp.ne.s32.totalorder %s1536_s6, 0  ;;  %s545_s27 = scalar_lea.sflag [#allocation5], %s544_s30 }
 0x1b4   : > { %p713_p1 = pnand %p717_p0, %p1543_p9 }
 0x1b6   : > { %1039 = dma.done.wait (!%p713_p1), %s545_s27, 256  }
 0x1b7   : > { %1041 = vsyncadd (!%p713_p1), %s545_s27, 4294967040  ;;  %s22_s25 = sadd.s32 1, %s1096_s25   ;;  %s1545_s9 = sld [smem:[#allocation12_spill]] }
 0x1b8   : > { %p1460_p7 = scmp.ge.s32.totalorder %s22_s25, 6   ;;  %s1546_s14 = sld [smem:[#allocation20_spill]] }
 0x1b9   : > { %s1547_s21 = sld [smem:[#allocation19_spill]]  ;;  %s1548_s20 = sld [smem:[#allocation13_spill]] }
 0x1ba   : > { %s1549_s4 = sld [smem:[#allocation18_spill]]  ;;  %s1550_s6 = sld [smem:[#allocation14_spill]] }
 0x1bb   : > { %s1551_s22 = sld [smem:[#allocation15_spill]]  ;;  %s1552_s23 = sld [smem:[#allocation16_spill]] }
 0x1bc   : > { %s1553_s24 = sld [smem:[#allocation17_spill]]  ;;  %s1554_s12 = smov %s1048_s13 }
 0x1bd   : > { %s1555_s13 = smov %s1545_s9  ;;  %s1556_s15 = smov %s1060_s16 }
 0x1be   : > { %s1557_s16 = smov %s1064_s17  ;;  %s1559_s18 = smov %s1072_s19 }
 0x1bf   : > { %s1558_s17 = smov %s1547_s21  ;;  %s1560_s19 = smov %s1548_s20 }
 0x1c0   : > { %s1561_s20 = smov %s1549_s4  ;;  %s1562_s21 = smov %s1550_s6 }
 0x1c1   :  { %21 = sbr.rel (!%p1460_p7) target bundleno = 12 (0xc), region = 98 }
 0x1c8   :  { %550 = vsyncpa [#allocation4], 1 }
 0x1c9   :  { %552 = vsyncpa [#allocation4 + $0x1], 1 }
 0x1ca   :  { %553 = vsyncpa [#allocation7], 1 }
 0x1cb   :  { %555 = vsyncpa [#allocation7 + $0x1], 1 }
 0x1cc   :  { %556 = vsyncpa [#allocation5], 1 }
 0x1cd   :  { %558 = vsyncpa [#allocation5 + $0x1], 1 }

</bundles_post_ra>
